<compile_context>
chip_gen: v7x
topology: tpu7x:2x2x1
jax: 0.10.0
libtpu: 0.0.40
codegen_flags: <defaults>
</compile_context>

<pallas_src>
import functools

import numpy as np
import jax
import jax.numpy as jnp
from jax import lax
from jax.experimental import pallas as pl
from jax.experimental.pallas import tpu as pltpu

_LANE = 128
_SUBLANE = 8
_TILE = _LANE * _SUBLANE          # 1024 elements = one (8,128) f32 vreg
_MAX_BLK_ROWS = 2048              # rows per grid step: 2048*128*4B = 1 MiB/input


# ----------------------------------------------------------------------------
# lgamma(x + 1) for x >= 0 via a Lanczos (g=7, n=9) RATIONAL approximation.
# The partial-fraction sum  c0 + sum_i c_i/(z+i)  is folded into P(z)/Q(z)
# once at import time (float64 numpy), so the kernel does 2 logs + 1 divide
# per element instead of 8 divisions + 2 logs.
# ----------------------------------------------------------------------------
_LANCZOS_G = 7.0
_LANCZOS_COEF = (
    0.99999999999980993,
    676.5203681218851,
    -1259.1392167224028,
    771.32342877765313,
    -176.61502916214059,
    12.507343278686905,
    -0.13857109526572012,
    9.9843695780195716e-6,
    1.5056327351493116e-7,
)
_HALF_LOG_2PI = 0.9189385332046727  # 0.5 * log(2*pi)


def _lanczos_rational():
    q = np.array([1.0])
    for i in range(1, 9):
        q = np.convolve(q, [1.0, float(i)])            # Q(z) = prod_i (z + i)
    p = _LANCZOS_COEF[0] * q
    for i in range(1, 9):
        qi = np.array([1.0])
        for j in range(1, 9):
            if j != i:
                qi = np.convolve(qi, [1.0, float(j)])  # Q(z) / (z + i)
        p = p + _LANCZOS_COEF[i] * np.concatenate([np.zeros(1), qi])
    return tuple(float(c) for c in p), tuple(float(c) for c in q)


_PNUM, _QDEN = _lanczos_rational()  # degree-8 numerator / denominator (hi-first)


def _horner(z, coeffs):
    acc = jnp.full_like(z, coeffs[0])
    for c in coeffs[1:]:
        acc = acc * z + c
    return acc


def _lgamma_1p(x):
    """lgamma(x+1) for x >= 0.  Valid for x < ~4e4 (Q(x) ~ x^8 must fit f32)."""
    # TODO(synk): use lax.lgamma if/when Mosaic lowers it; add a Stirling branch
    # for extremely large photon counts (> ~4e4) if such data ever appears.
    p = _horner(x, _PNUM)
    q = _horner(x, _QDEN)
    base = x + (_LANCZOS_G + 0.5)
    return _HALF_LOG_2PI + (x + 0.5) * jnp.log(base) - base + jnp.log(p / q)


# ----------------------------------------------------------------------------
# Kernel: one (batch element, row block) per grid step, both axes parallel.
# ----------------------------------------------------------------------------
def _poisson_nll_kernel(loglam_ref, x_ref, o_ref, *, n_valid, blk_rows, needs_mask):
    # loglam_ref, x_ref : (1, blk_rows, 128) VMEM blocks (flattened event dims)
    # o_ref             : (1, 8, 128) lane-dense partial-sum slab for this (b, k)
    n_bands = blk_rows // _SUBLANE
    blk_start = pl.program_id(1) * (blk_rows * _LANE)  # flat offset of this block

    if needs_mask:
        # Hoisted out of the band loop (JAX does not CSE broadcast_in_dim).
        flat_iota = (lax.broadcasted_iota(jnp.int32, (_SUBLANE, _LANE), 0) * _LANE
                     + lax.broadcasted_iota(jnp.int32, (_SUBLANE, _LANE), 1))

    def band(i, acc):
        r0 = pl.multiple_of(i * _SUBLANE, _SUBLANE)
        loglam = loglam_ref[0, pl.ds(r0, _SUBLANE), :]
        xv = x_ref[0, pl.ds(r0, _SUBLANE), :]
        term = _lgamma_1p(xv) - xv * loglam            # "+ lam" folded into wrapper
        if needs_mask:
            limit = n_valid - blk_start - r0 * _LANE   # dynamic scalar threshold
            term = jnp.where(flat_iota < limit, term, 0.0)
        return acc + term                              # vreg-resident accumulator

    acc = lax.fori_loop(0, n_bands, band,
                        jnp.zeros((_SUBLANE, _LANE), jnp.float32),
                        unroll=(True if n_bands <= 8 else 4))

    total = jnp.sum(acc)
    o_ref[...] = jnp.full((1, _SUBLANE, _LANE), total, dtype=o_ref.dtype)


# ----------------------------------------------------------------------------
# Host-side layout helpers + wrapper
# ----------------------------------------------------------------------------
def _padded_rows(n_valid):
    rows = -(-n_valid // _LANE)
    rows = -(-rows // _SUBLANE) * _SUBLANE
    if rows > _MAX_BLK_ROWS:
        rows = -(-rows // _MAX_BLK_ROWS) * _MAX_BLK_ROWS
    return rows


def _flatten_pad(arr):
    """(B, *event_dims) -> (B, rows, 128), zero-padded to whole row blocks."""
    B = arr.shape[0]
    n_valid = int(np.prod(arr.shape[1:]))
    rows = _padded_rows(n_valid)
    n_padded = rows * _LANE
    flat = arr.reshape(B, n_valid)
    if n_padded != n_valid:
        flat = jnp.pad(flat, ((0, 0), (0, n_padded - n_valid)))
    return flat.reshape(B, rows, _LANE), n_valid


def poisson_nll(loglam3, x3, lam_sum, n_valid):
    """Fused sum of [lgamma(x+1) - x*log(lam)]; '+ sum(lam)' added here."""
    B, rows, _ = loglam3.shape
    blk_rows = rows if rows <= _MAX_BLK_ROWS else _MAX_BLK_ROWS
    K = rows // blk_rows
    needs_mask = n_valid < rows * _LANE
    n_elems = B * rows * _LANE

    kernel = functools.partial(_poisson_nll_kernel, n_valid=n_valid,
                               blk_rows=blk_rows, needs_mask=needs_mask)
    out = pl.pallas_call(
        kernel,
        out_shape=jax.ShapeDtypeStruct((B, K * _SUBLANE, _LANE), jnp.float32),
        grid_spec=pltpu.PrefetchScalarGridSpec(
            num_scalar_prefetch=0,
            grid=(B, K),
            in_specs=[
                pl.BlockSpec((1, blk_rows, _LANE), lambda b, k: (b, k, 0)),
                pl.BlockSpec((1, blk_rows, _LANE), lambda b, k: (b, k, 0)),
            ],
            out_specs=pl.BlockSpec((1, _SUBLANE, _LANE), lambda b, k: (b, k, 0)),
        ),
        compiler_params=pltpu.CompilerParams(
            dimension_semantics=("parallel", "parallel")),
        cost_estimate=pl.CostEstimate(
            flops=45 * n_elems,
            transcendentals=3 * n_elems,
            bytes_accessed=8 * n_elems + 4 * B * K * _TILE),
    )(loglam3, x3)

    partial = out[:, ::_SUBLANE, 0]          # (B, K) per-block partial sums
    return partial.sum(axis=1) + lam_sum


class PoissonIntensityLayer:
    """JAX/Pallas port of ptycho_torch.model.PoissonIntensityLayer.

    forward(x) = negative log-likelihood of x under Poisson(amplitudes**2),
    with the last three dims treated as event dims (summed out).
    """

    def __init__(self, amplitudes):
        amplitudes = jnp.asarray(amplitudes, jnp.float32)
        if amplitudes.ndim < 3:
            raise ValueError("amplitudes must have at least 3 (event) dims")
        self.event_shape = amplitudes.shape[-3:]
        self.batch_shape = amplitudes.shape[:-3]
        self._B = int(np.prod(self.batch_shape)) if self.batch_shape else 1
        lam = (amplitudes ** 2).reshape((self._B,) + self.event_shape)
        # Precomputed once (matches the torch module precomputing Lambda):
        #   sum(lam) per batch element (added in the wrapper) and log(lam).
        # Note: lam == 0 gives log_lam = -inf and x*log_lam = NaN at x == 0,
        # identical to the torch/XLA reference behavior.
        self._lam_sum = jnp.sum(lam.reshape(self._B, -1), axis=1)
        self._loglam3, self._n_valid = _flatten_pad(jnp.log(lam))

    def __call__(self, x):
        # TODO(synk): for v5e HBM-bound cases x could be shipped as bf16/f16
        # (counts must be exactly representable); kept f32 for generality.
        x = jnp.asarray(x, jnp.float32)
        expected = self.batch_shape + self.event_shape
        if x.shape != expected:
            raise ValueError(f"expected shape {expected}, got {x.shape}")
        x3, _ = _flatten_pad(x.reshape((self._B,) + self.event_shape))
        nll = poisson_nll(self._loglam3, x3, self._lam_sum, self._n_valid)
        return nll.reshape(self.batch_shape)


def _ref_forward(amplitudes, x):
    """Pure-JAX reference of -Independent(Poisson(a^2), 3).log_prob(x)."""
    lam = jnp.asarray(amplitudes, jnp.float32) ** 2
    x = jnp.asarray(x, jnp.float32)
    logp = x * jnp.log(lam) - lam - lax.lgamma(x + 1.0)
    return -jnp.sum(logp, axis=(-3, -2, -1))


if __name__ == "__main__":
    key = jax.random.PRNGKey(0)
    k_a, k_x = jax.random.split(key)

    B, C, H, W = 2, 4, 16, 16                      # x: (2, 4, 16, 16)
    amplitudes = jax.random.uniform(k_a, (B, C, H, W), jnp.float32,
                                    minval=0.1, maxval=2.0)
    # Count-like observations drawn from the matching Poisson model.
    x = jax.random.poisson(k_x, amplitudes ** 2).astype(jnp.float32)

    layer = PoissonIntensityLayer(amplitudes)
    out = jax.block_until_ready(layer(x))
    assert out.shape == (B,), out.shape

    ref = _ref_forward(amplitudes, x)
    np.testing.assert_allclose(np.asarray(out), np.asarray(ref),
                               rtol=3e-4, atol=3e-2)
    print("KERNEL_OK")
</pallas_src>

<mosaic_0001>
module attributes {stable_mosaic.version = 11 : i64} {
  func.func @_poisson_nll_kernel(%arg0: i32, %arg1: i32, %arg2: memref<1x8x128xf32, #tpu.memory_space<vmem>>, %arg3: memref<1x8x128xf32, #tpu.memory_space<vmem>>, %arg4: memref<1x8x128xf32, #tpu.memory_space<vmem>>) attributes {dimension_semantics = [#tpu.dimension_semantics<parallel>, #tpu.dimension_semantics<parallel>], iteration_bounds = array<i64: 2, 1>, scalar_prefetch = 0 : i64, scratch_operands = 0 : i64, tpu.core_type = #tpu.core_type<tc>, window_params = [{transform_indices = @transform_0, window_bounds = array<i64: 1, 8, 128>}, {transform_indices = @transform_1, window_bounds = array<i64: 1, 8, 128>}, {transform_indices = @transform_2, window_bounds = array<i64: 1, 8, 128>}]} {
    %cst = arith.constant 0.000000e+00 : f32
    %0 = vector.broadcast %cst : f32 to vector<8x128xf32>
    %c0_i32 = arith.constant 0 : i32
    %c8_i32 = arith.constant 8 : i32
    %1 = arith.muli %c0_i32, %c8_i32 : i32
    %2 = tpu.assume_multiple %1, 8 : i32
    %c0 = arith.constant 0 : index
    %3 = arith.index_cast %2 : i32 to index
    %c0_0 = arith.constant 0 : index
    %4 = vector.load %arg2[%c0, %3, %c0_0] : memref<1x8x128xf32, #tpu.memory_space<vmem>>, vector<1x8x128xf32>
    %5 = vector.shape_cast %4 : vector<1x8x128xf32> to vector<8x128xf32>
    %c0_1 = arith.constant 0 : index
    %6 = arith.index_cast %2 : i32 to index
    %c0_2 = arith.constant 0 : index
    %7 = vector.load %arg3[%c0_1, %6, %c0_2] : memref<1x8x128xf32, #tpu.memory_space<vmem>>, vector<1x8x128xf32>
    %8 = vector.shape_cast %7 : vector<1x8x128xf32> to vector<8x128xf32>
    %cst_3 = arith.constant 1.000000e+00 : f32
    %9 = vector.broadcast %cst_3 : f32 to vector<8x128xf32>
    %10 = arith.mulf %9, %8 : vector<8x128xf32>
    %cst_4 = arith.constant 60.4583321 : f32
    %11 = vector.broadcast %cst_4 : f32 to vector<8x128xf32>
    %12 = arith.addf %10, %11 : vector<8x128xf32>
    %13 = arith.mulf %12, %8 : vector<8x128xf32>
    %cst_5 = arith.constant 1599.04248 : f32
    %14 = vector.broadcast %cst_5 : f32 to vector<8x128xf32>
    %15 = arith.addf %13, %14 : vector<8x128xf32>
    %16 = arith.mulf %15, %8 : vector<8x128xf32>
    %cst_6 = arith.constant 24165.5098 : f32
    %17 = vector.broadcast %cst_6 : f32 to vector<8x128xf32>
    %18 = arith.addf %16, %17 : vector<8x128xf32>
    %19 = arith.mulf %18, %8 : vector<8x128xf32>
    %cst_7 = arith.constant 228235.219 : f32
    %20 = vector.broadcast %cst_7 : f32 to vector<8x128xf32>
    %21 = arith.addf %19, %20 : vector<8x128xf32>
    %22 = arith.mulf %21, %8 : vector<8x128xf32>
    %cst_8 = arith.constant 1379496.25 : f32
    %23 = vector.broadcast %cst_8 : f32 to vector<8x128xf32>
    %24 = arith.addf %22, %23 : vector<8x128xf32>
    %25 = arith.mulf %24, %8 : vector<8x128xf32>
    %cst_9 = arith.constant 0x4A9F05EA : f32
    %26 = vector.broadcast %cst_9 : f32 to vector<8x128xf32>
    %27 = arith.addf %25, %26 : vector<8x128xf32>
    %28 = arith.mulf %27, %8 : vector<8x128xf32>
    %cst_10 = arith.constant 0x4B2B9D51 : f32
    %29 = vector.broadcast %cst_10 : f32 to vector<8x128xf32>
    %30 = arith.addf %28, %29 : vector<8x128xf32>
    %31 = arith.mulf %30, %8 : vector<8x128xf32>
    %cst_11 = arith.constant 0x4B220ADA : f32
    %32 = vector.broadcast %cst_11 : f32 to vector<8x128xf32>
    %33 = arith.addf %31, %32 : vector<8x128xf32>
    %cst_12 = arith.constant 1.000000e+00 : f32
    %34 = vector.broadcast %cst_12 : f32 to vector<8x128xf32>
    %35 = arith.mulf %34, %8 : vector<8x128xf32>
    %cst_13 = arith.constant 3.600000e+01 : f32
    %36 = vector.broadcast %cst_13 : f32 to vector<8x128xf32>
    %37 = arith.addf %35, %36 : vector<8x128xf32>
    %38 = arith.mulf %37, %8 : vector<8x128xf32>
    %cst_14 = arith.constant 5.460000e+02 : f32
    %39 = vector.broadcast %cst_14 : f32 to vector<8x128xf32>
    %40 = arith.addf %38, %39 : vector<8x128xf32>
    %41 = arith.mulf %40, %8 : vector<8x128xf32>
    %cst_15 = arith.constant 4.536000e+03 : f32
    %42 = vector.broadcast %cst_15 : f32 to vector<8x128xf32>
    %43 = arith.addf %41, %42 : vector<8x128xf32>
    %44 = arith.mulf %43, %8 : vector<8x128xf32>
    %cst_16 = arith.constant 2.244900e+04 : f32
    %45 = vector.broadcast %cst_16 : f32 to vector<8x128xf32>
    %46 = arith.addf %44, %45 : vector<8x128xf32>
    %47 = arith.mulf %46, %8 : vector<8x128xf32>
    %cst_17 = arith.constant 6.728400e+04 : f32
    %48 = vector.broadcast %cst_17 : f32 to vector<8x128xf32>
    %49 = arith.addf %47, %48 : vector<8x128xf32>
    %50 = arith.mulf %49, %8 : vector<8x128xf32>
    %cst_18 = arith.constant 1.181240e+05 : f32
    %51 = vector.broadcast %cst_18 : f32 to vector<8x128xf32>
    %52 = arith.addf %50, %51 : vector<8x128xf32>
    %53 = arith.mulf %52, %8 : vector<8x128xf32>
    %cst_19 = arith.constant 1.095840e+05 : f32
    %54 = vector.broadcast %cst_19 : f32 to vector<8x128xf32>
    %55 = arith.addf %53, %54 : vector<8x128xf32>
    %56 = arith.mulf %55, %8 : vector<8x128xf32>
    %cst_20 = arith.constant 4.032000e+04 : f32
    %57 = vector.broadcast %cst_20 : f32 to vector<8x128xf32>
    %58 = arith.addf %56, %57 : vector<8x128xf32>
    %cst_21 = arith.constant 7.500000e+00 : f32
    %59 = vector.broadcast %cst_21 : f32 to vector<8x128xf32>
    %60 = arith.addf %8, %59 : vector<8x128xf32>
    %cst_22 = arith.constant 5.000000e-01 : f32
    %61 = vector.broadcast %cst_22 : f32 to vector<8x128xf32>
    %62 = arith.addf %8, %61 : vector<8x128xf32>
    %63 = math.log %60 : vector<8x128xf32>
    %64 = arith.mulf %62, %63 : vector<8x128xf32>
    %cst_23 = arith.constant 0.918938517 : f32
    %65 = vector.broadcast %cst_23 : f32 to vector<8x128xf32>
    %66 = arith.addf %65, %64 : vector<8x128xf32>
    %67 = arith.subf %66, %60 : vector<8x128xf32>
    %68 = arith.divf %33, %58 : vector<8x128xf32>
    %69 = math.log %68 : vector<8x128xf32>
    %70 = arith.addf %67, %69 : vector<8x128xf32>
    %71 = arith.mulf %8, %5 : vector<8x128xf32>
    %72 = arith.subf %70, %71 : vector<8x128xf32>
    %73 = arith.addf %0, %72 : vector<8x128xf32>
    %c1_i32 = arith.constant 1 : i32
    %74 = vector.shape_cast %73 : vector<8x128xf32> to vector<1x8x128xf32>
    %cst_24 = arith.constant dense<0.000000e+00> : vector<1xf32>
    %75 = vector.multi_reduction <add>, %74, %cst_24 [1, 2] : vector<1x8x128xf32> to vector<1xf32>
    %76 = vector.shape_cast %75 : vector<1xf32> to vector<1x1x1xf32>
    %77 = vector.extract %76[0, 0, 0] : f32 from vector<1x1x1xf32>
    %78 = vector.broadcast %77 : f32 to vector<1x8x128xf32>
    %c0_25 = arith.constant 0 : index
    %c0_26 = arith.constant 0 : index
    %c0_27 = arith.constant 0 : index
    %79 = vector.load %arg4[%c0_25, %c0_26, %c0_27] : memref<1x8x128xf32, #tpu.memory_space<vmem>>, vector<1x8x128xf32>
    tpu.vector_store %arg4[%c0_25, %c0_26, %c0_27], %78 {strides = array<i32>} : memref<1x8x128xf32, #tpu.memory_space<vmem>>, vector<1x8x128xf32>,
    return
  }
  func.func @transform_0(%arg0: i32, %arg1: i32) -> (i32, i32, i32) {
    %c0_i32 = arith.constant 0 : i32
    %c0_i32_0 = arith.constant 0 : i32
    return %arg0, %arg1, %c0_i32 : i32, i32, i32
  }
  func.func @transform_1(%arg0: i32, %arg1: i32) -> (i32, i32, i32) {
    %c0_i32 = arith.constant 0 : i32
    %c0_i32_0 = arith.constant 0 : i32
    return %arg0, %arg1, %c0_i32 : i32, i32, i32
  }
  func.func @transform_2(%arg0: i32, %arg1: i32) -> (i32, i32, i32) {
    %c0_i32 = arith.constant 0 : i32
    %c0_i32_0 = arith.constant 0 : i32
    return %arg0, %arg1, %c0_i32 : i32, i32, i32
  }
}

</mosaic_0001>

<bundles_post_ra>
// kernel: tpu_custom_call.1
= control target key start
LH: loop header
LB: loop body
LE: loop exit
PB: predicated region body
PF: predicated region fallthrough
CT: control target
= control target key end

     0   :  { %7 = vsyncpa [#allocation3], 0  ;;  %s877_s0 = inlined_call_operand.hbm [shape: f32[2,8,128], index: 0, kind: input, shape index: {}]   ;;  %s878_s1 = inlined_call_operand.hbm [shape: f32[2,8,128], index: 1, kind: input, shape index: {}]   ;;  %s879_s2 = inlined_call_operand.hbm [shape: f32[2,8,128], index: 2, kind: output, shape index: {}]  }
   0x1   :  { %9 = vsyncpa [#allocation3 + $0x1], 0 }
   0x2   :  { %10 = vsyncpa [#allocation6], 0 }
   0x3   :  { %12 = vsyncpa [#allocation6 + $0x1], 0 }
   0x4   :  { %13 = vsyncpa [#allocation4], 0 }
   0x5   :  { %15 = vsyncpa [#allocation4 + $0x1], 0  ;;  %s650_s9 = smov 0   ;;  %s652_s10 = smov 0  }
   0x6   :  { %s654_s11 = smov 0   ;;  %s656_s12 = smov 0  }
   0x7   :  { %s658_s13 = smov 0   ;;  %s660_s14 = smov 0  }
   0x8 LB: > { %s393_s15 = sadd.s32 4294967295, %s630_s14   ;;  %s394_s16 = sadd.s32 4294967294, %s630_s14   ;;  %s630_s14 = sphi %s660_s14, %s21_s14   ;;  %s626_s13 = sphi %s658_s13, %s899_s13   ;;  %s622_s12 = sphi %s656_s12, %s898_s12   ;;  %s618_s11 = sphi %s654_s11, %s897_s11   ;;  %s614_s10 = sphi %s652_s10, %s896_s10   ;;  %s610_s9 = sphi %s650_s9, %s895_s9  }
   0x9   : > { %s33_s17 = sadd.s32 1, %s626_s13  ;;  %s42_s18 = sadd.s32 1, %s618_s11 }
   0xa   : > { %p35_p0 = scmp.ge.s32.totalorder %s33_s17, 2  ;;  %p49_p1 = scmp.ne.s32.totalorder %s618_s11, %s614_s10 }
   0xb   : > { %p50_p2 = scmp.eq.s32.totalorder %s630_s14, 0  ;;  %p55_p3 = scmp.ne.s32.totalorder %s614_s10, %s610_s9 }
   0xc   : > { %s901_s17 = smov (%p35_p0, %s33_s17), 0  ;;  %p56_p5 = scmp.eq.s32.totalorder %s393_s15, 0 }
   0xd   : > { %p691_p4 = por %p50_p2, %p49_p1  ;;  %s37_s20 = ssub.s32 %s626_s13, %s901_s17 }
   0xe   : > { %p109_p6 = scmp.eq.s32.totalorder %s393_s15, 1  ;;  %p40_p7 = scmp.eq.s32.totalorder %s37_s20, 0 }
   0xf   : > { %p697_p8 = por %p56_p5, %p55_p3  ;;  %p115_p10 = scmp.eq.s32.totalorder %s394_s16, 1 }
  0x10   : > { %p701_p9 = por %p109_p6, %p49_p1  ;;  %p428_p13 = scmp.lt.s32.totalorder %s630_s14, 2 }
  0x11   : > { %s883_s21 = scalar_select %p697_p8, 1, 0 }
  0x12   : > { %s884_s22 = scalar_select %p701_p9, 1, 0 }
  0x13   : > { %s706_s23 = scalar_select %p40_p7, %s618_s11, %s42_s18  }
  0x14   : > { %p708_p11 = por %p115_p10, %p55_p3  ;;  %s715_s25 = sand.u32 1, %s618_s11  }
  0x15   : > { %s397_s26 = sshll.u32 %s715_s25, 3  ;;  %s398_s27 = sshll.u32 %s626_s13, 7 }
  0x16   : > { %s885_s24 = scalar_select %p708_p11, 1, 0 }
  0x17   : > { %s724_s30 = scalar_lea.hbm %s877_s0, %s398_s27  ;;  %s139_s3 = scalar_lea.vmem [#allocation2], %s397_s26 }
  0x18   : > { %s147_s4 = sshll.u32 %s139_s3, 4  ;;  %p732_p0 = pnand %p428_p13, %p691_p4  ;;  %s728_s4 = int_to_ptr.vmem [resolvable:$true] %s147_s4 }
  0x19   : > { %s136_s6 = scalar_lea.sflag [#allocation3], %s715_s25  ;;  %s484_s7 = scalar_lea.hbm %s724_s30, 128 }
  0x1a   : > { %p485_p3 = scmp.ne.s32.totalorder %s724_s30, %s484_s7  ;;  %p486_p5 = pneg %p732_p0 }
  0x1b   : > { %s489_s16 = scalar_lea.hbm %s877_s0, 256  ;;  %p490_p4 = scmp.lt.u32.totalorder %s724_s30, %s877_s0 }
  0x1c   : > { %p487_p6 = pnand %p486_p5, %p485_p3  ;;  %p491_p10 = scmp.lt.u32.totalorder %s489_s16, %s484_s7 }
  0x1d   : > { %p493_p12 = scmp.lt.u32.totalorder %s484_s7, %s724_s30 }
  0x1e   : > { %p488_p7 = pneg %p487_p6  ;;  %p492_p13 = por %p491_p10, %p490_p4 }
  0x20   : > { %p494_p1 = por %p493_p12, %p492_p13 }
  0x22   : > { %p495_p2 = pnand %p494_p1, %p488_p7 }
  0x24   : > { %498 = shalt.err (!%p495_p2)
}
  0x25   : > { %s499_s20 = scalar_lea.vmem %s728_s4, 128  ;;  %s632_s28 = smov [#allocation2]  }
  0x26   : > { %p500_p3 = scmp.ne.s32.totalorder %s728_s4, %s499_s20  ;;  %s504_s29 = sshll.u32 %s632_s28, 4  ;;  %s505_s29 = int_to_ptr.vmem [resolvable:$false] %s504_s29 }
  0x27   : > { %s506_s3 = scalar_lea.vmem %s505_s29, 256  ;;  %p507_p9 = scmp.lt.s32.totalorder %s728_s4, %s505_s29 }
  0x28   : > { %p502_p6 = pnand %p500_p3, %p486_p5  ;;  %p508_p4 = scmp.lt.s32.totalorder %s506_s3, %s499_s20 }
  0x2a   : > { %p503_p11 = pneg %p502_p6  ;;  %p509_p10 = por %p508_p4, %p507_p9 }
  0x2c   : > { %p510_p12 = pnand %p509_p10, %p503_p11 }
  0x2e   : > { %513 = shalt.err (!%p510_p12)
}
  0x2f   : > { %420 = dma.hbm_to_vmem [thread:$0]  (!%p732_p0), %s724_s30, 128, %s728_s4, %s136_s6  }
  0x30   : > { %p887_p1 = scmp.lt.s32.totalorder %s630_s14, 3  ;;  %p888_p2 = scmp.ge.s32.totalorder %s630_s14, 1 }
  0x31   : > { %s777_s16 = scalar_lea.hbm %s878_s1, %s398_s27  ;;  %s158_s18 = scalar_lea.vmem [#allocation5], %s397_s26 }
  0x32   : > { %p768_p7 = pnand %p888_p2, %p887_p1  ;;  %s166_s19 = sshll.u32 %s158_s18, 4  ;;  %s167_s19 = int_to_ptr.vmem [resolvable:$true] %s166_s19 }
  0x33   : > { %s155_s30 = scalar_lea.sflag [#allocation6], %s715_s25  ;;  %s514_s4 = scalar_lea.hbm %s777_s16, 128 }
  0x34   : > { %s889_s7 = scalar_select %p768_p7, 1, 0 }
  0x35   : > { %p515_p9 = scmp.ne.s32.totalorder %s777_s16, %s514_s4  ;;  %s519_s27 = scalar_lea.hbm %s878_s1, 256 }
  0x36   : > { %p520_p3 = scmp.lt.u32.totalorder %s777_s16, %s878_s1  ;;  %p521_p6 = scmp.lt.u32.totalorder %s519_s27, %s514_s4 }
  0x37   : > { %p517_p11 = pnand %p515_p9, %p486_p5  ;;  %p523_p10 = scmp.lt.u32.totalorder %s514_s4, %s777_s16 }
  0x38   : > { %p522_p4 = por %p521_p6, %p520_p3 }
  0x39   : > { %p518_p13 = pneg %p517_p11 }
  0x3a   : > { %p524_p12 = por %p523_p10, %p522_p4 }
  0x3c   : > { %p525_p1 = pnand %p524_p12, %p518_p13 }
  0x3e   : > { %528 = shalt.err (!%p525_p1)
}
  0x3f   : > { %s529_s25 = scalar_lea.vmem %s167_s19, 128  ;;  %s633_s26 = smov [#allocation5]  }
  0x40   : > { %p530_p2 = scmp.ne.s32.totalorder %s167_s19, %s529_s25  ;;  %s534_s3 = sshll.u32 %s633_s26, 4  ;;  %s535_s3 = int_to_ptr.vmem [resolvable:$false] %s534_s3 }
  0x41   : > { %s536_s8 = scalar_lea.vmem %s535_s3, 256  ;;  %p537_p8 = scmp.lt.s32.totalorder %s167_s19, %s535_s3 }
  0x42   : > { %p532_p9 = pnand %p530_p2, %p486_p5  ;;  %p538_p7 = scmp.lt.s32.totalorder %s536_s8, %s529_s25 }
  0x44   : > { %p533_p11 = pneg %p532_p9  ;;  %p539_p3 = por %p538_p7, %p537_p8 }
  0x46   : > { %p540_p6 = pnand %p539_p3, %p533_p11 }
  0x48   : > { %543 = shalt.err (!%p540_p6)
}
  0x49   : > { %423 = dma.hbm_to_vmem [thread:$0]  (!%p732_p0), %s777_s16, 128, %s167_s19, %s155_s30  }
  0x4a   : > { %p890_p13 = scmp.ne.s32.totalorder %s889_s7, 0 }
  0x4b   : > { %s804_s15 = sand.u32 (!%p890_p13), 1, %s614_s10   ;;  %p891_p8 = scmp.ne.s32.totalorder (!%p890_p13), %s883_s21, 0 }
  0x4c   : > { %175 = sbr.rel (%p890_p13) target bundleno = 366 (0x16e), region = 28  ;;  %s807_s18 = sshll.u32 (!%p890_p13), %s804_s15, 3 }
  0x4d   : > { %s178_s4 = scalar_lea.sflag (!%p890_p13), [#allocation3], %s804_s15  ;;  %s181_s6 = scalar_lea.vmem (!%p890_p13), [#allocation2], %s807_s18 }
  0x53   : > { %597 = dma.done.wait (%p891_p8), %s178_s4, 128  }
  0x54   : > { %599 = vsyncadd (%p891_p8), %s178_s4, 4294967168  ;;  %s187_s5 = scalar_lea.sflag [#allocation6], %s804_s15  ;;  %s190_s7 = scalar_lea.vmem [#allocation5], %s807_s18 }
  0x55   : > { %601 = dma.done.wait (%p891_p8), %s187_s5, 128  }
  0x56   : > { %603 = vsyncadd (%p891_p8), %s187_s5, 4294967168  ;;  %v217_v0 = vld [vmem:[%s190_s7] sm:$0xff]  ;;  %v216_v39 = vld [vmem:[%s181_s6] sm:$0xff]  ;;  %s215_s21 = scalar_lea.vmem [#allocation7], %s807_s18  ;;  %s406_s19 = sshll.u32 %s622_s12, 7 }
  0x57   : > { %v218_v1 = vadd.f32 60.458332, %v217_v0  ;;  %v233_v2 = vadd.f32 36.0, %v217_v0  ;;  %v248_v24 = vadd.f32 7.5, %v217_v0  ;;  %v249_v34 = vadd.f32 0.5, %v217_v0  ;;  %s289_s16 = sshll.u32 %s215_s21, 4  ;;  %s830_s28 = scalar_lea.hbm %s879_s2, %s406_s19  ;;  %s825_s16 = int_to_ptr.vmem [resolvable:$true] %s289_s16 }
  0x58   : > { %v260_v43 = vmul.f32 %v217_v0, %v216_v39  ;;  %s275_s29 = scalar_lea.sflag [#allocation4], %s804_s15  ;;  %s544_s25 = scalar_lea.vmem %s825_s16, 128 }
  0x59   : > { %v219_v3 = vmul.f32 %v218_v1, %v217_v0  ;;  %v234_v4 = vmul.f32 %v233_v2, %v217_v0  ;;  %478 = vlog2.f32 %v248_v24  ;;  %p545_p0 = scmp.ne.s32.totalorder %s825_s16, %s544_s25  ;;  %p892_p5 = scmp.ne.s32.totalorder %s884_s22, 0 }
  0x5a   : > { %s634_s12 = smov [#allocation7]  }
  0x5b   : > { %v220_v5 = vadd.f32 1599.0425, %v219_v3  ;;  %v235_v6 = vadd.f32 546.0, %v234_v4  ;;  %p546_p7 = pnand %p545_p0, %p892_p5  ;;  %s548_s26 = sshll.u32 %s634_s12, 4  ;;  %s549_s26 = int_to_ptr.vmem [resolvable:$false] %s548_s26 }
  0x5c   : > { %s550_s3 = scalar_lea.vmem %s549_s26, 256  ;;  %p551_p10 = scmp.lt.s32.totalorder %s825_s16, %s549_s26 }
  0x5d   : > { %v221_v7 = vmul.f32 %v220_v5, %v217_v0  ;;  %v236_v8 = vmul.f32 %v235_v6, %v217_v0  ;;  %p547_p4 = pneg %p546_p7  ;;  %p552_p12 = scmp.lt.s32.totalorder %s550_s3, %s544_s25 }
  0x5f   : > { %v222_v9 = vadd.f32 24165.51, %v221_v7  ;;  %v237_v10 = vadd.f32 4536.0, %v236_v8  ;;  %p553_p1 = por %p552_p12, %p551_p10 }
  0x61   : > { %v223_v11 = vmul.f32 %v222_v9, %v217_v0  ;;  %v238_v12 = vmul.f32 %v237_v10, %v217_v0  ;;  %p554_p2 = pnand %p553_p1, %p547_p4 }
  0x63   : > { %v224_v13 = vadd.f32 228235.22, %v223_v11  ;;  %v239_v14 = vadd.f32 22449.0, %v238_v12  ;;  %v479_v31 = vpop.eup %478 }
  0x64   : > { %v251_v35 = vmul.f32 0.6931472, %v479_v31 }
  0x65   : > { %v225_v15 = vmul.f32 %v224_v13, %v217_v0  ;;  %v240_v16 = vmul.f32 %v239_v14, %v217_v0 }
  0x66   : > { %v252_v37 = vmul.f32 %v251_v35, %v249_v34 }
  0x67   : > { %v226_v17 = vadd.f32 1379496.3, %v225_v15  ;;  %v241_v18 = vadd.f32 67284.0, %v240_v16 }
  0x68   : > { %v253_v38 = vadd.f32 0.9189385, %v252_v37 }
  0x69   : > { %v227_v19 = vmul.f32 %v226_v17, %v217_v0  ;;  %v242_v20 = vmul.f32 %v241_v18, %v217_v0 }
  0x6a   : > { %v254_v40 = vsub.f32 %v253_v38, %v248_v24 }
  0x6b   : > { %v243_v21 = vadd.f32 118124.0, %v242_v20  ;;  %v228_v22 = vadd.f32 5210869.0, %v227_v19 }
  0x6d   : > { %v244_v23 = vmul.f32 %v243_v21, %v217_v0  ;;  %v229_v26 = vmul.f32 %v228_v22, %v217_v0 }
  0x6f   : > { %v245_v25 = vadd.f32 109584.0, %v244_v23  ;;  %v230_v29 = vadd.f32 11246929.0, %v229_v26 }
  0x71   : > { %v246_v27 = vmul.f32 %v245_v25, %v217_v0  ;;  %v231_v30 = vmul.f32 %v230_v29, %v217_v0 }
  0x73   : > { %v247_v28 = vadd.f32 40320.0, %v246_v27  ;;  %v232_v32 = vadd.f32 10619610.0, %v231_v30 }
  0x75   : > { %480 = vrcp.f32 %v247_v28 }
  0x7f   : > { %v481_v33 = vpop.eup %480 }
  0x80   : > { %v256_v36 = vmul.f32 %v481_v33, %v232_v32 }
  0x82   : > { %482 = vlog2.f32 %v256_v36 }
  0x8c   : > { %v483_v41 = vpop.eup %482 }
  0x8d   : > { %v258_v42 = vmul.f32 0.6931472, %v483_v41 }
  0x8f   : > { %v259_v44 = vadd.f32 %v258_v42, %v254_v40 }
  0x91   : > { %v261_v45 = vsub.f32 %v259_v44, %v260_v43 }
  0x93   : > { %263 = vadd.xlane.f32.xlu0 %v261_v45 }
 0x120   : > { %v264_v46 = vpop.xlane.xlu0 %263 }
 0x121   : > { %v265_v47 = vrot.slane %v264_v46, 4 }
 0x123   : > { %v266_v48 = vadd.f32 %v265_v47, %v264_v46 }
 0x125   : > { %v267_v49 = vrot.slane %v266_v48, 2 }
 0x127   : > { %v268_v50 = vadd.f32 %v267_v49, %v266_v48 }
 0x129   : > { %v269_v51 = vrot.slane %v268_v50, 1 }
 0x12b   : > { %v270_v52 = vadd.f32 %v269_v51, %v268_v50 }
 0x12d   : > { %409 = vpush %v270_v52 }
 0x15e   : > { %s410_s30 = spop %409 }
 0x15f   : > { %v272_v53 = vstv %s410_s30 }
 0x160   : > { %273 = vst [vmem:[%s215_s21] sm:$0xff] %v272_v53 }
 0x161   : > { %557 = shalt.err (!%p554_p2)
}
 0x162   : > { %s558_s8 = scalar_lea.hbm %s830_s28, 128  ;;  %s562_s4 = scalar_lea.hbm %s879_s2, 256 }
 0x163   : > { %p559_p9 = scmp.ne.s32.totalorder %s830_s28, %s558_s8  ;;  %p563_p6 = scmp.lt.u32.totalorder %s830_s28, %s879_s2 }
 0x164   : > { %p564_p13 = scmp.lt.u32.totalorder %s562_s4, %s558_s8  ;;  %p566_p0 = scmp.lt.u32.totalorder %s558_s8, %s830_s28 }
 0x165   : > { %p560_p11 = pnand %p559_p9, %p892_p5 }
 0x166   : > { %p565_p8 = por %p564_p13, %p563_p6 }
 0x167   : > { %p561_p3 = pneg %p560_p11 }
 0x168   : > { %p567_p7 = por %p566_p0, %p565_p8 }
 0x16a   : > { %p568_p4 = pnand %p567_p7, %p561_p3 }
 0x16c   : > { %571 = shalt.err (!%p568_p4)
}
 0x16d   : > { %415 = dma.vmem_to_hbm [thread:$0]  (%p892_p5), %s825_s16, 128, %s830_s28, %s275_s29  }
 0x16e PF: > { %s301_s7 = sand.u32 1, %s610_s9   ;;  %p893_p10 = scmp.ne.s32.totalorder %s885_s24, 0 }
 0x16f   : > { %p894_p12 = scmp.ge.s32.totalorder %s630_s14, 2  ;;  %s302_s21 = scalar_lea.sflag [#allocation4], %s301_s7 }
 0x171   : > { %p425_p1 = pnand %p894_p12, %p893_p10 }
 0x173   : > { %605 = dma.done.wait (!%p425_p1), %s302_s21, 128  }
 0x174   : > { %607 = vsyncadd (!%p425_p1), %s302_s21, 4294967168  ;;  %s21_s14 = sadd.s32 1, %s630_s14   ;;  %s895_s9 = smov %s614_s10 }
 0x175   : > { %p18_p2 = scmp.ge.s32.totalorder %s21_s14, 4   ;;  %s896_s10 = smov %s618_s11 }
 0x176   : > { %s897_s11 = smov %s706_s23  ;;  %s898_s12 = smov %s626_s13 }
 0x177   : > { %s899_s13 = smov %s901_s17  ;;  %20 = sbr.rel (!%p18_p2) target bundleno = 8 (0x8), region = 86 }
 0x17e   :  { %307 = vsyncpa [#allocation3], 1 }
 0x17f   :  { %309 = vsyncpa [#allocation3 + $0x1], 1 }
 0x180   :  { %310 = vsyncpa [#allocation6], 1 }
 0x181   :  { %312 = vsyncpa [#allocation6 + $0x1], 1 }
 0x182   :  { %313 = vsyncpa [#allocation4], 1 }
 0x183   :  { %315 = vsyncpa [#allocation4 + $0x1], 1 }

</bundles_post_ra>
